<compile_context>
chip_gen: v6e
topology: v6e:2x2x1
jax: 0.10.0
libtpu: 0.0.40
codegen_flags: <defaults>
</compile_context>

<pallas_src>
import functools

import jax
import jax.numpy as jnp
from jax.experimental import pallas as pl
from jax.experimental.pallas import tpu as pltpu

BETA = 1e-7


def _round_up(x, m):
    return ((x + m - 1) // m) * m


def _pearson_kernel(p_ref, t_ref, o_ref,
                    sx_ref, sy_ref, sxx_ref, syy_ref, sxy_ref,
                    *, n_true, n_tc):
    k = pl.program_id(1)
    BB, Tc = p_ref.shape

    @pl.when(k == 0)
    def _():
        sx_ref[...] = jnp.zeros_like(sx_ref)
        sy_ref[...] = jnp.zeros_like(sy_ref)
        sxx_ref[...] = jnp.zeros_like(sxx_ref)
        syy_ref[...] = jnp.zeros_like(syy_ref)
        sxy_ref[...] = jnp.zeros_like(sxy_ref)

    def chunk(ref, j, valid):
        # Load one 128-lane chunk, cast to f32, mask tail lanes if needed.
        v = ref[:, j * 128:(j + 1) * 128].astype(jnp.float32)
        if valid < 128:  # static: only the single partial chunk pays this
            lane = jax.lax.broadcasted_iota(jnp.int32, v.shape, 1)
            v = jnp.where(lane < valid, v, 0.0)
        return v

    def accumulate(rem):
        # rem: static count of valid lanes in this tile (0 < rem <= Tc).
        n_full, partial = divmod(rem, 128)
        valids = [128] * n_full + ([partial] if partial else [])
        n_ch = len(valids)

        # Pass A: x -> Sx, Sxx (<=2 register-resident (BB,128) accumulators)
        sx = jnp.zeros((BB, 128), jnp.float32)
        sxx = jnp.zeros((BB, 128), jnp.float32)
        for j in range(n_ch):
            xs = chunk(p_ref, j, valids[j])
            sx = sx + xs
            sxx = sxx + xs * xs
        sx_ref[...] += sx
        sxx_ref[...] += sxx

        # Pass B: y -> Sy, Syy
        sy = jnp.zeros((BB, 128), jnp.float32)
        syy = jnp.zeros((BB, 128), jnp.float32)
        for j in range(n_ch):
            ys = chunk(t_ref, j, valids[j])
            sy = sy + ys
            syy = syy + ys * ys
        sy_ref[...] += sy
        syy_ref[...] += syy

        # Pass C: x*y -> Sxy
        sxy = jnp.zeros((BB, 128), jnp.float32)
        for j in range(n_ch):
            xs = chunk(p_ref, j, valids[j])
            ys = chunk(t_ref, j, valids[j])
            sxy = sxy + xs * ys
        sxy_ref[...] += sxy

    tail = n_true - (n_tc - 1) * Tc   # static, in (0, Tc]
    if tail == Tc:                     # T divides evenly: uniform, mask-free path
        accumulate(Tc)
    elif n_tc == 1:                    # single (possibly ragged) tile
        accumulate(tail)
    else:
        @pl.when(k < n_tc - 1)
        def _():
            accumulate(Tc)

        @pl.when(k == n_tc - 1)
        def _():
            accumulate(tail)

    @pl.when(k == n_tc - 1)
    def _():
        inv_n = jnp.float32(1.0 / n_true)
        # Single cross-lane (XLU) reduce per moment, once per row block.
        sx = jnp.sum(sx_ref[...], axis=-1, keepdims=True)
        sy = jnp.sum(sy_ref[...], axis=-1, keepdims=True)
        sxx = jnp.sum(sxx_ref[...], axis=-1, keepdims=True)
        syy = jnp.sum(syy_ref[...], axis=-1, keepdims=True)
        sxy = jnp.sum(sxy_ref[...], axis=-1, keepdims=True)
        cov = sxy - sx * sy * inv_n
        # Clamp: one-pass moments can go slightly negative (cancellation) -> NaN guard.
        ssx = jnp.maximum(sxx - sx * sx * inv_n, 0.0)
        ssy = jnp.maximum(syy - sy * sy * inv_n, 0.0)
        loss = 1.0 - cov * jax.lax.rsqrt((ssx + BETA) * (ssy + BETA))  # (BB, 1)
        # Lane-dense, unmasked full-width store; wrapper reads column 0.
        o_ref[...] = jnp.broadcast_to(loss, o_ref.shape)


def batch_pearson_loss_wave(predict, target, *, block_b=128, block_t=None):
    """predict, target: (B, T) arrays (any float dtype). Returns scalar f32 loss."""
    assert predict.shape == target.shape
    B, T = predict.shape

    itemsize = min(predict.dtype.itemsize, target.dtype.itemsize)
    sub = max(8, 32 // max(itemsize, 1))   # sublane multiple: 8 (f32), 16 (bf16), 32 (i8)

    # --- row block: multiple of `sub`, or exactly B (full extent) when B isn't ---
    if B % sub == 0:
        BB = min(block_b, B)
        if B <= block_b and B >= 2 * sub:
            # >=2 row blocks so both v7x TensorCores stream HBM in parallel.
            BB = _round_up((B + 1) // 2, sub)
    else:
        BB = B if B <= block_b else block_b
    n_rb = -(-B // BB)

    # --- T chunk: multiple of 128, sized to ~2 MiB per input tile per step ---
    if block_t is None:
        bt = (2 * 1024 * 1024) // (max(BB, 8) * max(itemsize, 1))
        bt = max(128, min(8192, (bt // 128) * 128))
    else:
        bt = max(128, (block_t // 128) * 128)
    Tc = min(bt, _round_up(T, 128))
    n_tc = -(-T // Tc)

    kernel = functools.partial(_pearson_kernel, n_true=T, n_tc=n_tc)

    bytes_accessed = B * T * (predict.dtype.itemsize + target.dtype.itemsize) + B * 128 * 4

    losses = pl.pallas_call(
        kernel,
        out_shape=jax.ShapeDtypeStruct((B, 128), jnp.float32),
        grid_spec=pltpu.PrefetchScalarGridSpec(
            num_scalar_prefetch=0,
            grid=(n_rb, n_tc),
            in_specs=[
                pl.BlockSpec((BB, Tc), lambda i, k: (i, k)),
                pl.BlockSpec((BB, Tc), lambda i, k: (i, k)),
            ],
            out_specs=pl.BlockSpec((BB, 128), lambda i, k: (i, 0)),
            scratch_shapes=[pltpu.VMEM((BB, 128), jnp.float32)] * 5,
        ),
        compiler_params=pltpu.CompilerParams(
            dimension_semantics=("parallel", "arbitrary"),
        ),
        cost_estimate=pl.CostEstimate(
            flops=8 * B * T,
            transcendentals=B,
            bytes_accessed=bytes_accessed,
        ),
    )(predict, target)

    # Column 0 of the lane-dense output holds the per-row losses.
    return jnp.mean(losses[:, 0])


def _reference(predict, target):
    # Pure-JAX reference mirroring the PyTorch module (two-pass form).
    def per_batch(x, y):
        x = x.astype(jnp.float32)
        y = y.astype(jnp.float32)
        xc = x - jnp.mean(x)
        yc = y - jnp.mean(y)
        return 1.0 - jnp.sum(xc * yc) / (
            jnp.sqrt(jnp.sum(xc * xc) + BETA) * jnp.sqrt(jnp.sum(yc * yc) + BETA)
        )
    return jnp.mean(jax.vmap(per_batch)(predict, target))


if __name__ == "__main__":
    key = jax.random.PRNGKey(0)
    k1, k2, k3, k4 = jax.random.split(key, 4)

    # Primary case (module-consistent small shapes): everything evenly tiled.
    B, T = 4, 256
    predict = jax.random.normal(k1, (B, T), dtype=jnp.float32)
    target = jax.random.normal(k2, (B, T), dtype=jnp.float32)
    result = jax.block_until_ready(batch_pearson_loss_wave(predict, target))
    ref = jax.block_until_ready(_reference(predict, target))
    assert jnp.allclose(result, ref, atol=1e-5, rtol=1e-5), (result, ref)

    # Secondary case: exercises the ragged tail T-chunk mask, multiple T chunks,
    # the 2-row-block megacore split, and a ragged last row block.
    B2, T2 = 24, 300
    p2 = jax.random.normal(k3, (B2, T2), dtype=jnp.float32)
    t2 = jax.random.normal(k4, (B2, T2), dtype=jnp.float32)
    r2 = jax.block_until_ready(batch_pearson_loss_wave(p2, t2, block_t=128))
    ref2 = jax.block_until_ready(_reference(p2, t2))
    assert jnp.allclose(r2, ref2, atol=1e-5, rtol=1e-5), (r2, ref2)

    print("KERNEL_OK")
</pallas_src>

<mosaic_0001>
module attributes {stable_mosaic.version = 11 : i64} {
  func.func @_pearson_kernel(%arg0: i32, %arg1: i32, %arg2: memref<4x256xf32, #tpu.memory_space<vmem>>, %arg3: memref<4x256xf32, #tpu.memory_space<vmem>>, %arg4: memref<4x128xf32, #tpu.memory_space<vmem>>, %arg5: memref<4x128xf32, #tpu.memory_space<vmem>>, %arg6: memref<4x128xf32, #tpu.memory_space<vmem>>, %arg7: memref<4x128xf32, #tpu.memory_space<vmem>>, %arg8: memref<4x128xf32, #tpu.memory_space<vmem>>, %arg9: memref<4x128xf32, #tpu.memory_space<vmem>>) attributes {dimension_semantics = [#tpu.dimension_semantics<parallel>, #tpu.dimension_semantics<arbitrary>], iteration_bounds = array<i64: 1, 1>, scalar_prefetch = 0 : i64, scratch_operands = 5 : i64, tpu.core_type = #tpu.core_type<tc>, window_params = [{transform_indices = @transform_0, window_bounds = array<i64: 4, 256>}, {transform_indices = @transform_1, window_bounds = array<i64: 4, 256>}, {transform_indices = @transform_2, window_bounds = array<i64: 4, 128>}]} {
    %c0_i32 = arith.constant 0 : i32
    %0 = arith.cmpi eq, %arg1, %c0_i32 : i32
    %1 = arith.extui %0 : i1 to i32
    %c0_i32_0 = arith.constant 0 : i32
    %2 = arith.cmpi ne, %1, %c0_i32_0 : i32
    scf.if %2 {
      %cst_41 = arith.constant 0.000000e+00 : f32
      %50 = vector.broadcast %cst_41 : f32 to vector<4x128xf32>
      %c0_42 = arith.constant 0 : index
      %c0_43 = arith.constant 0 : index
      %51 = vector.load %arg5[%c0_42, %c0_43] : memref<4x128xf32, #tpu.memory_space<vmem>>, vector<4x128xf32>
      tpu.vector_store %arg5[%c0_42, %c0_43], %50 {strides = array<i32>} : memref<4x128xf32, #tpu.memory_space<vmem>>, vector<4x128xf32>,
      %cst_44 = arith.constant 0.000000e+00 : f32
      %52 = vector.broadcast %cst_44 : f32 to vector<4x128xf32>
      %c0_45 = arith.constant 0 : index
      %c0_46 = arith.constant 0 : index
      %53 = vector.load %arg6[%c0_45, %c0_46] : memref<4x128xf32, #tpu.memory_space<vmem>>, vector<4x128xf32>
      tpu.vector_store %arg6[%c0_45, %c0_46], %52 {strides = array<i32>} : memref<4x128xf32, #tpu.memory_space<vmem>>, vector<4x128xf32>,
      %cst_47 = arith.constant 0.000000e+00 : f32
      %54 = vector.broadcast %cst_47 : f32 to vector<4x128xf32>
      %c0_48 = arith.constant 0 : index
      %c0_49 = arith.constant 0 : index
      %55 = vector.load %arg7[%c0_48, %c0_49] : memref<4x128xf32, #tpu.memory_space<vmem>>, vector<4x128xf32>
      tpu.vector_store %arg7[%c0_48, %c0_49], %54 {strides = array<i32>} : memref<4x128xf32, #tpu.memory_space<vmem>>, vector<4x128xf32>,
      %cst_50 = arith.constant 0.000000e+00 : f32
      %56 = vector.broadcast %cst_50 : f32 to vector<4x128xf32>
      %c0_51 = arith.constant 0 : index
      %c0_52 = arith.constant 0 : index
      %57 = vector.load %arg8[%c0_51, %c0_52] : memref<4x128xf32, #tpu.memory_space<vmem>>, vector<4x128xf32>
      tpu.vector_store %arg8[%c0_51, %c0_52], %56 {strides = array<i32>} : memref<4x128xf32, #tpu.memory_space<vmem>>, vector<4x128xf32>,
      %cst_53 = arith.constant 0.000000e+00 : f32
      %58 = vector.broadcast %cst_53 : f32 to vector<4x128xf32>
      %c0_54 = arith.constant 0 : index
      %c0_55 = arith.constant 0 : index
      %59 = vector.load %arg9[%c0_54, %c0_55] : memref<4x128xf32, #tpu.memory_space<vmem>>, vector<4x128xf32>
      tpu.vector_store %arg9[%c0_54, %c0_55], %58 {strides = array<i32>} : memref<4x128xf32, #tpu.memory_space<vmem>>, vector<4x128xf32>,
    } else {
    }
    %cst = arith.constant 0.000000e+00 : f32
    %3 = vector.broadcast %cst : f32 to vector<4x128xf32>
    %cst_1 = arith.constant 0.000000e+00 : f32
    %4 = vector.broadcast %cst_1 : f32 to vector<4x128xf32>
    %c0 = arith.constant 0 : index
    %c0_2 = arith.constant 0 : index
    %5 = vector.load %arg2[%c0, %c0_2] : memref<4x256xf32, #tpu.memory_space<vmem>>, vector<4x128xf32>
    %6 = arith.addf %3, %5 : vector<4x128xf32>
    %7 = arith.mulf %5, %5 : vector<4x128xf32>
    %8 = arith.addf %4, %7 : vector<4x128xf32>
    %c0_3 = arith.constant 0 : index
    %c128 = arith.constant 128 : index
    %9 = vector.load %arg2[%c0_3, %c128] : memref<4x256xf32, #tpu.memory_space<vmem>>, vector<4x128xf32>
    %10 = arith.addf %6, %9 : vector<4x128xf32>
    %11 = arith.mulf %9, %9 : vector<4x128xf32>
    %12 = arith.addf %8, %11 : vector<4x128xf32>
    %c0_4 = arith.constant 0 : index
    %c0_5 = arith.constant 0 : index
    %13 = vector.load %arg5[%c0_4, %c0_5] : memref<4x128xf32, #tpu.memory_space<vmem>>, vector<4x128xf32>
    %14 = arith.addf %13, %10 : vector<4x128xf32>
    %c0_6 = arith.constant 0 : index
    %c0_7 = arith.constant 0 : index
    %15 = vector.load %arg5[%c0_6, %c0_7] : memref<4x128xf32, #tpu.memory_space<vmem>>, vector<4x128xf32>
    tpu.vector_store %arg5[%c0_6, %c0_7], %14 {strides = array<i32>} : memref<4x128xf32, #tpu.memory_space<vmem>>, vector<4x128xf32>,
    %c0_8 = arith.constant 0 : index
    %c0_9 = arith.constant 0 : index
    %16 = vector.load %arg7[%c0_8, %c0_9] : memref<4x128xf32, #tpu.memory_space<vmem>>, vector<4x128xf32>
    %17 = arith.addf %16, %12 : vector<4x128xf32>
    %c0_10 = arith.constant 0 : index
    %c0_11 = arith.constant 0 : index
    %18 = vector.load %arg7[%c0_10, %c0_11] : memref<4x128xf32, #tpu.memory_space<vmem>>, vector<4x128xf32>
    tpu.vector_store %arg7[%c0_10, %c0_11], %17 {strides = array<i32>} : memref<4x128xf32, #tpu.memory_space<vmem>>, vector<4x128xf32>,
    %cst_12 = arith.constant 0.000000e+00 : f32
    %19 = vector.broadcast %cst_12 : f32 to vector<4x128xf32>
    %cst_13 = arith.constant 0.000000e+00 : f32
    %20 = vector.broadcast %cst_13 : f32 to vector<4x128xf32>
    %c0_14 = arith.constant 0 : index
    %c0_15 = arith.constant 0 : index
    %21 = vector.load %arg3[%c0_14, %c0_15] : memref<4x256xf32, #tpu.memory_space<vmem>>, vector<4x128xf32>
    %22 = arith.addf %19, %21 : vector<4x128xf32>
    %23 = arith.mulf %21, %21 : vector<4x128xf32>
    %24 = arith.addf %20, %23 : vector<4x128xf32>
    %c0_16 = arith.constant 0 : index
    %c128_17 = arith.constant 128 : index
    %25 = vector.load %arg3[%c0_16, %c128_17] : memref<4x256xf32, #tpu.memory_space<vmem>>, vector<4x128xf32>
    %26 = arith.addf %22, %25 : vector<4x128xf32>
    %27 = arith.mulf %25, %25 : vector<4x128xf32>
    %28 = arith.addf %24, %27 : vector<4x128xf32>
    %c0_18 = arith.constant 0 : index
    %c0_19 = arith.constant 0 : index
    %29 = vector.load %arg6[%c0_18, %c0_19] : memref<4x128xf32, #tpu.memory_space<vmem>>, vector<4x128xf32>
    %30 = arith.addf %29, %26 : vector<4x128xf32>
    %c0_20 = arith.constant 0 : index
    %c0_21 = arith.constant 0 : index
    %31 = vector.load %arg6[%c0_20, %c0_21] : memref<4x128xf32, #tpu.memory_space<vmem>>, vector<4x128xf32>
    tpu.vector_store %arg6[%c0_20, %c0_21], %30 {strides = array<i32>} : memref<4x128xf32, #tpu.memory_space<vmem>>, vector<4x128xf32>,
    %c0_22 = arith.constant 0 : index
    %c0_23 = arith.constant 0 : index
    %32 = vector.load %arg8[%c0_22, %c0_23] : memref<4x128xf32, #tpu.memory_space<vmem>>, vector<4x128xf32>
    %33 = arith.addf %32, %28 : vector<4x128xf32>
    %c0_24 = arith.constant 0 : index
    %c0_25 = arith.constant 0 : index
    %34 = vector.load %arg8[%c0_24, %c0_25] : memref<4x128xf32, #tpu.memory_space<vmem>>, vector<4x128xf32>
    tpu.vector_store %arg8[%c0_24, %c0_25], %33 {strides = array<i32>} : memref<4x128xf32, #tpu.memory_space<vmem>>, vector<4x128xf32>,
    %cst_26 = arith.constant 0.000000e+00 : f32
    %35 = vector.broadcast %cst_26 : f32 to vector<4x128xf32>
    %c0_27 = arith.constant 0 : index
    %c0_28 = arith.constant 0 : index
    %36 = vector.load %arg2[%c0_27, %c0_28] : memref<4x256xf32, #tpu.memory_space<vmem>>, vector<4x128xf32>
    %c0_29 = arith.constant 0 : index
    %c0_30 = arith.constant 0 : index
    %37 = vector.load %arg3[%c0_29, %c0_30] : memref<4x256xf32, #tpu.memory_space<vmem>>, vector<4x128xf32>
    %38 = arith.mulf %36, %37 : vector<4x128xf32>
    %39 = arith.addf %35, %38 : vector<4x128xf32>
    %c0_31 = arith.constant 0 : index
    %c128_32 = arith.constant 128 : index
    %40 = vector.load %arg2[%c0_31, %c128_32] : memref<4x256xf32, #tpu.memory_space<vmem>>, vector<4x128xf32>
    %c0_33 = arith.constant 0 : index
    %c128_34 = arith.constant 128 : index
    %41 = vector.load %arg3[%c0_33, %c128_34] : memref<4x256xf32, #tpu.memory_space<vmem>>, vector<4x128xf32>
    %42 = arith.mulf %40, %41 : vector<4x128xf32>
    %43 = arith.addf %39, %42 : vector<4x128xf32>
    %c0_35 = arith.constant 0 : index
    %c0_36 = arith.constant 0 : index
    %44 = vector.load %arg9[%c0_35, %c0_36] : memref<4x128xf32, #tpu.memory_space<vmem>>, vector<4x128xf32>
    %45 = arith.addf %44, %43 : vector<4x128xf32>
    %c0_37 = arith.constant 0 : index
    %c0_38 = arith.constant 0 : index
    %46 = vector.load %arg9[%c0_37, %c0_38] : memref<4x128xf32, #tpu.memory_space<vmem>>, vector<4x128xf32>
    tpu.vector_store %arg9[%c0_37, %c0_38], %45 {strides = array<i32>} : memref<4x128xf32, #tpu.memory_space<vmem>>, vector<4x128xf32>,
    %c0_i32_39 = arith.constant 0 : i32
    %47 = arith.cmpi eq, %arg1, %c0_i32_39 : i32
    %48 = arith.extui %47 : i1 to i32
    %c0_i32_40 = arith.constant 0 : i32
    %49 = arith.cmpi ne, %48, %c0_i32_40 : i32
    scf.if %49 {
      %c0_41 = arith.constant 0 : index
      %c0_42 = arith.constant 0 : index
      %50 = vector.load %arg5[%c0_41, %c0_42] : memref<4x128xf32, #tpu.memory_space<vmem>>, vector<4x128xf32>
      %cst_43 = arith.constant dense<0.000000e+00> : vector<4xf32>
      %51 = vector.multi_reduction <add>, %50, %cst_43 [1] : vector<4x128xf32> to vector<4xf32>
      %52 = vector.shape_cast %51 : vector<4xf32> to vector<4x1xf32>
      %c0_44 = arith.constant 0 : index
      %c0_45 = arith.constant 0 : index
      %53 = vector.load %arg6[%c0_44, %c0_45] : memref<4x128xf32, #tpu.memory_space<vmem>>, vector<4x128xf32>
      %cst_46 = arith.constant dense<0.000000e+00> : vector<4xf32>
      %54 = vector.multi_reduction <add>, %53, %cst_46 [1] : vector<4x128xf32> to vector<4xf32>
      %55 = vector.shape_cast %54 : vector<4xf32> to vector<4x1xf32>
      %c0_47 = arith.constant 0 : index
      %c0_48 = arith.constant 0 : index
      %56 = vector.load %arg7[%c0_47, %c0_48] : memref<4x128xf32, #tpu.memory_space<vmem>>, vector<4x128xf32>
      %cst_49 = arith.constant dense<0.000000e+00> : vector<4xf32>
      %57 = vector.multi_reduction <add>, %56, %cst_49 [1] : vector<4x128xf32> to vector<4xf32>
      %58 = vector.shape_cast %57 : vector<4xf32> to vector<4x1xf32>
      %c0_50 = arith.constant 0 : index
      %c0_51 = arith.constant 0 : index
      %59 = vector.load %arg8[%c0_50, %c0_51] : memref<4x128xf32, #tpu.memory_space<vmem>>, vector<4x128xf32>
      %cst_52 = arith.constant dense<0.000000e+00> : vector<4xf32>
      %60 = vector.multi_reduction <add>, %59, %cst_52 [1] : vector<4x128xf32> to vector<4xf32>
      %61 = vector.shape_cast %60 : vector<4xf32> to vector<4x1xf32>
      %c0_53 = arith.constant 0 : index
      %c0_54 = arith.constant 0 : index
      %62 = vector.load %arg9[%c0_53, %c0_54] : memref<4x128xf32, #tpu.memory_space<vmem>>, vector<4x128xf32>
      %cst_55 = arith.constant dense<0.000000e+00> : vector<4xf32>
      %63 = vector.multi_reduction <add>, %62, %cst_55 [1] : vector<4x128xf32> to vector<4xf32>
      %64 = vector.shape_cast %63 : vector<4xf32> to vector<4x1xf32>
      %65 = arith.mulf %52, %55 : vector<4x1xf32>
      %cst_56 = arith.constant 3.906250e-03 : f32
      %66 = vector.broadcast %cst_56 : f32 to vector<4x1xf32>
      %67 = arith.mulf %65, %66 : vector<4x1xf32>
      %68 = arith.subf %64, %67 : vector<4x1xf32>
      %69 = arith.mulf %52, %52 : vector<4x1xf32>
      %cst_57 = arith.constant 3.906250e-03 : f32
      %70 = vector.broadcast %cst_57 : f32 to vector<4x1xf32>
      %71 = arith.mulf %69, %70 : vector<4x1xf32>
      %72 = arith.subf %58, %71 : vector<4x1xf32>
      %cst_58 = arith.constant 0.000000e+00 : f32
      %73 = vector.broadcast %cst_58 : f32 to vector<4x1xf32>
      %74 = arith.maximumf %72, %73 : vector<4x1xf32>
      %75 = arith.mulf %55, %55 : vector<4x1xf32>
      %cst_59 = arith.constant 3.906250e-03 : f32
      %76 = vector.broadcast %cst_59 : f32 to vector<4x1xf32>
      %77 = arith.mulf %75, %76 : vector<4x1xf32>
      %78 = arith.subf %61, %77 : vector<4x1xf32>
      %cst_60 = arith.constant 0.000000e+00 : f32
      %79 = vector.broadcast %cst_60 : f32 to vector<4x1xf32>
      %80 = arith.maximumf %78, %79 : vector<4x1xf32>
      %cst_61 = arith.constant 1.000000e-07 : f32
      %81 = vector.broadcast %cst_61 : f32 to vector<4x1xf32>
      %82 = arith.addf %74, %81 : vector<4x1xf32>
      %cst_62 = arith.constant 1.000000e-07 : f32
      %83 = vector.broadcast %cst_62 : f32 to vector<4x1xf32>
      %84 = arith.addf %80, %83 : vector<4x1xf32>
      %85 = arith.mulf %82, %84 : vector<4x1xf32>
      %86 = math.rsqrt %85 : vector<4x1xf32>
      %87 = arith.mulf %68, %86 : vector<4x1xf32>
      %cst_63 = arith.constant 1.000000e+00 : f32
      %88 = vector.broadcast %cst_63 : f32 to vector<4x1xf32>
      %89 = arith.subf %88, %87 : vector<4x1xf32>
      %90 = vector.shape_cast %89 : vector<4x1xf32> to vector<4x1xf32>
      %91 = vector.broadcast %90 : vector<4x1xf32> to vector<4x128xf32>
      %c0_64 = arith.constant 0 : index
      %c0_65 = arith.constant 0 : index
      %92 = vector.load %arg4[%c0_64, %c0_65] : memref<4x128xf32, #tpu.memory_space<vmem>>, vector<4x128xf32>
      tpu.vector_store %arg4[%c0_64, %c0_65], %91 {strides = array<i32>} : memref<4x128xf32, #tpu.memory_space<vmem>>, vector<4x128xf32>,
    } else {
    }
    return
  }
  func.func @transform_0(%arg0: i32, %arg1: i32) -> (i32, i32) {
    %c0_i32 = arith.constant 0 : i32
    return %arg0, %arg1 : i32, i32
  }
  func.func @transform_1(%arg0: i32, %arg1: i32) -> (i32, i32) {
    %c0_i32 = arith.constant 0 : i32
    return %arg0, %arg1 : i32, i32
  }
  func.func @transform_2(%arg0: i32, %arg1: i32) -> (i32, i32) {
    %c0_i32 = arith.constant 0 : i32
    %c0_i32_0 = arith.constant 0 : i32
    return %arg0, %c0_i32 : i32, i32
  }
}

</mosaic_0001>

<bundles_post_ra>
// kernel: tpu_custom_call.1
= control target key start
LH: loop header
LB: loop body
LE: loop exit
PB: predicated region body
PF: predicated region fallthrough
CT: control target
= control target key end

     0   :  { %7 = vsyncpa [#allocation8], 0  ;;  %s242_s0 = inlined_call_operand.hbm [shape: f32[4,256], index: 0, kind: input, shape index: {}]   ;;  %s243_s1 = inlined_call_operand.hbm [shape: f32[4,256], index: 1, kind: input, shape index: {}]   ;;  %s244_s2 = inlined_call_operand.hbm [shape: f32[4,128], index: 2, kind: output, shape index: {}]  }
   0x1   :  { %8 = vsyncpa [#allocation11], 0 }
   0x2   :  { %9 = vsyncpa [#allocation9], 0  ;;  %s214_s9 = smov [#allocation7]   ;;  %s215_s11 = smov [#allocation10]  }
   0x3   :  { %s16_s10 = sshll.u32 %s214_s9, 4  ;;  %s26_s12 = sshll.u32 %s215_s11, 4  ;;  %s17_s10 = int_to_ptr.vmem [resolvable:$true] %s16_s10  ;;  %s27_s12 = int_to_ptr.vmem [resolvable:$true] %s26_s12 }
   0x4   :  { %s156_s13 = scalar_lea.vmem %s17_s10, 128  ;;  %p161_p1 = scmp.lt.s32.totalorder %s17_s10, %s17_s10 }
   0x5   :  { %p157_p0 = scmp.ne.s32.totalorder %s17_s10, %s156_s13  ;;  %p162_p2 = scmp.lt.s32.totalorder %s156_s13, %s156_s13 }
   0x7   :  { %p163_p3 = por %p162_p2, %p161_p1 }
   0x9   :  { %p164_p4 = pnand %p163_p3, %p157_p0 }
   0xb   :  { %167 = shalt.err (!%p164_p4)
}
   0xc   :  { %19 = dma.hbm_to_vmem [thread:$0]  %s242_s0, 128, %s17_s10, [#allocation8]  }
   0xd   :  { %s176_s16 = scalar_lea.vmem %s27_s12, 128  ;;  %p181_p6 = scmp.lt.s32.totalorder %s27_s12, %s27_s12 }
   0xe   :  { %p177_p5 = scmp.ne.s32.totalorder %s27_s12, %s176_s16  ;;  %p182_p7 = scmp.lt.s32.totalorder %s176_s16, %s176_s16 }
  0x10   :  { %p183_p8 = por %p182_p7, %p181_p6 }
  0x12   :  { %p184_p9 = pnand %p183_p8, %p177_p5 }
  0x14   :  { %187 = shalt.err (!%p184_p9)
}
  0x15   :  { %29 = dma.hbm_to_vmem [thread:$0]  %s243_s1, 128, %s27_s12, [#allocation11]  }
  0x16   :  { %208 = dma.done.wait [#allocation8], 128  }
  0x17   :  { %209 = vsyncadd [#allocation8], 4294967168 }
  0x18   :  { %210 = dma.done.wait [#allocation11], 128  }
  0x19   :  { %211 = vsyncadd [#allocation11], 4294967168  ;;  %v216_v0 = vmov 0.0   ;;  %v45_v1 = vld [vmem:[#allocation7] sm:$0xf]  ;;  %vm88_vm0 = vcmask 1043456  }
  0x1a   :  { %40 = vst [vmem:[#allocation2] sm:$0xf] %v216_v0  ;;  %41 = vst [vmem:[#allocation3] sm:$0xf] %v216_v0  ;;  %v49_v2 = vld [vmem:[#allocation7 + $0x4] sm:$0xf]  ;;  %v47_v6 = vmul.f32 %v45_v1, %v45_v1 }
  0x1b   :  { %42 = vst [vmem:[#allocation4] sm:$0xf] %v216_v0  ;;  %43 = vst [vmem:[#allocation5] sm:$0xf] %v216_v0  ;;  %v59_v3 = vld [vmem:[#allocation10] sm:$0xf]  ;;  %v50_v4 = vadd.f32 %v49_v2, %v45_v1  ;;  %v51_v7 = vmul.f32 %v49_v2, %v49_v2 }
  0x1c   :  { %44 = vst [vmem:[#allocation6] sm:$0xf] %v216_v0  ;;  %v63_v9 = vld [vmem:[#allocation10 + $0x4] sm:$0xf]  ;;  %v61_v10 = vmul.f32 %v59_v3, %v59_v3  ;;  %v73_v15 = vld [vmem:[#allocation7] sm:$0xf] }
  0x1d   :  { %v64_v11 = vadd.f32 %v63_v9, %v59_v3  ;;  %v65_v13 = vmul.f32 %v63_v9, %v63_v9  ;;  %v52_v17 = vadd.f32 %v51_v7, %v47_v6  ;;  %v74_v18 = vld [vmem:[#allocation10] sm:$0xf]  ;;  %v77_v19 = vld [vmem:[#allocation7 + $0x4] sm:$0xf]  ;;  %v78_v20 = vld [vmem:[#allocation10 + $0x4] sm:$0xf] }
  0x1e   :  { %v75_v23 = vmul.f32 %v74_v18, %v73_v15  ;;  %v79_v24 = vmul.f32 %v78_v20, %v77_v19  ;;  %s217_s0 = smov [#allocation12]  }
  0x1f   :  { %v66_v22 = vadd.f32 %v65_v13, %v61_v10  ;;  %s132_s1 = sshll.u32 %s217_s0, 4  ;;  %s133_s1 = int_to_ptr.vmem [resolvable:$true] %s132_s1 }
  0x20   :  { %v80_v28 = vadd.f32 %v79_v24, %v75_v23  ;;  %s188_s19 = scalar_lea.vmem %s133_s1, 64  ;;  %p193_p11 = scmp.lt.s32.totalorder %s133_s1, %s133_s1 }
  0x21   :  { %v53_v5 = vld [vmem:[#allocation2] sm:$0xf]  ;;  %v67_v12 = vld [vmem:[#allocation3] sm:$0xf]  ;;  %p189_p10 = scmp.ne.s32.totalorder %s133_s1, %s188_s19  ;;  %p194_p12 = scmp.lt.s32.totalorder %s188_s19, %s188_s19 }
  0x22   :  { %v56_v8 = vld [vmem:[#allocation4] sm:$0xf]  ;;  %v70_v14 = vld [vmem:[#allocation5] sm:$0xf]  ;;  %v54_v16 = vadd.f32 %v53_v5, %v50_v4  ;;  %v68_v21 = vadd.f32 %v67_v12, %v64_v11 }
  0x23   :  { %v57_v25 = vadd.f32 %v56_v8, %v52_v17  ;;  %v81_v26 = vld [vmem:[#allocation6] sm:$0xf]  ;;  %v71_v27 = vadd.f32 %v70_v14, %v66_v22  ;;  %p195_p13 = por %p194_p12, %p193_p11 }
  0x24   :  { %55 = vst [vmem:[#allocation2] sm:$0xf] %v54_v16  ;;  %69 = vst [vmem:[#allocation3] sm:$0xf] %v68_v21  ;;  %v82_v29 = vadd.f32 %v81_v26, %v80_v28 }
  0x25   :  { %58 = vst [vmem:[#allocation4] sm:$0xf] %v57_v25  ;;  %72 = vst [vmem:[#allocation5] sm:$0xf] %v71_v27  ;;  %p196_p0 = pnand %p195_p13, %p189_p10 }
  0x26   :  { %83 = vst [vmem:[#allocation6] sm:$0xf] %v82_v29 }
  0x2b   :  { %v87_v30 = vld [vmem:[#allocation2] sm:$0xf]  ;;  %v92_v32 = vld [vmem:[#allocation3] sm:$0xf] }
  0x2c   :  { %v89_v31 = vsel %vm88_vm0, %v87_v30, 0.0  ;;  %v96_v33 = vld [vmem:[#allocation4] sm:$0xf]  ;;  %v93_v35 = vsel %vm88_vm0, %v92_v32, 0.0  ;;  %v100_v36 = vld [vmem:[#allocation5] sm:$0xf] }
  0x2d   :  { %90 = vadd.xlane.f32.xlu0 %v89_v31  ;;  %v97_v34 = vsel %vm88_vm0, %v96_v33, 0.0  ;;  %v101_v37 = vsel %vm88_vm0, %v100_v36, 0.0  ;;  %v104_v38 = vld [vmem:[#allocation6] sm:$0xf] }
  0x2e   :  { %98 = vadd.xlane.f32.xlu1 %v97_v34  ;;  %v105_v39 = vsel %vm88_vm0, %v104_v38, 0.0 }
  0x31   :  { %94 = vadd.xlane.f32.xlu0 %v93_v35 }
  0x32   :  { %102 = vadd.xlane.f32.xlu1 %v101_v37 }
  0x35   :  { %106 = vadd.xlane.f32.xlu0 %v105_v39 }
  0xb6   :  { %v91_v40 = vpop.xlane.xlu0 %90 }
  0xb7   :  { %v111_v41 = vmul.f32 %v91_v40, %v91_v40  ;;  %v99_v42 = vpop.xlane.xlu1 %98 }
  0xb9   :  { %v112_v43 = vmul.f32 0.00390625, %v111_v41 }
  0xba   :  { %v95_v44 = vpop.xlane.xlu0 %94 }
  0xbb   :  { %v113_v45 = vsub.f32 %v99_v42, %v112_v43  ;;  %v115_v46 = vmul.f32 %v95_v44, %v95_v44  ;;  %v103_v47 = vpop.xlane.xlu1 %102  ;;  %v108_v55 = vmul.f32 %v95_v44, %v91_v40 }
  0xbd   :  { %v116_v48 = vmul.f32 0.00390625, %v115_v46  ;;  %v114_v49 = vmax.f32 %v113_v45, 0.0  ;;  %v109_v56 = vmul.f32 0.00390625, %v108_v55 }
  0xbe   :  { %v107_v57 = vpop.xlane.xlu0 %106 }
  0xbf   :  { %v117_v50 = vsub.f32 %v103_v47, %v116_v48  ;;  %v119_v52 = vadd.f32 1e-07, %v114_v49  ;;  %v110_v58 = vsub.f32 %v107_v57, %v109_v56 }
  0xc1   :  { %v118_v51 = vmax.f32 %v117_v50, 0.0 }
  0xc3   :  { %v120_v53 = vadd.f32 1e-07, %v118_v51 }
  0xc5   :  { %v121_v54 = vmul.f32 %v120_v53, %v119_v52 }
  0xc7   :  { %146 = vrsqrt.f32 %v121_v54 }
  0xd4   :  { %v147_v59 = vpop.eup %146 }
  0xd5   :  { %v123_v60 = vmul.f32 %v147_v59, %v110_v58 }
  0xd7   :  { %v124_v61 = vsub.f32 1.0, %v123_v60 }
  0xd9   :  { %125 = vst [vmem:[#allocation12] sm:$0xf] %v124_v61 }
  0xda   :  { %199 = shalt.err (!%p196_p0)
}
  0xdb   :  { %135 = dma.vmem_to_hbm [thread:$0]  %s133_s1, 64, %s244_s2, [#allocation9]  }
  0xdc   :  { %212 = dma.done.wait [#allocation9], 64  }
  0xdd   :  { %213 = vsyncadd [#allocation9], 4294967232 }
  0xde   :  { %139 = vsyncpa [#allocation8], 1 }
  0xdf   :  { %140 = vsyncpa [#allocation11], 1 }
  0xe0   :  { %141 = vsyncpa [#allocation9], 1 }

</bundles_post_ra>
